<compile_context>
chip_gen: v6e
topology: v6e:2x2x1
jax: 0.10.0
libtpu: 0.0.40
codegen_flags: <defaults>
</compile_context>

<pallas_src>
import functools

import jax
import jax.numpy as jnp
from jax import lax
from jax.experimental import pallas as pl
from jax.experimental.pallas import tpu as pltpu


def _sinusoid_kernel(pkv_ref, inv_freq_ref, pos_off_ref, odd_ref, o_ref, *, ppr):
    # o_ref block: (ts, w) where w == d_model (standard path) or 128 (flat path,
    # with ppr = 128 // d_model positions packed per slab row).
    ts, w = o_ref.shape

    # Absolute position of the first element of this tile's first slab row.
    start = pkv_ref[0] + pl.program_id(0) * (ts * ppr)          # int32 scalar

    row = lax.broadcasted_iota(jnp.int32, (ts, w), 0)            # slab-row index
    pos = (start + row * ppr + pos_off_ref[...]).astype(jnp.float32)

    angle = pos * inv_freq_ref[...]                               # (ts, w)
    # Exact parity with the reference: select cos/sin of the SAME angle.
    val = jnp.where(odd_ref[...] == 1, jnp.cos(angle), jnp.sin(angle))
    o_ref[...] = val.astype(o_ref.dtype)


def _pick_row_tile(rows_total, width, itemsize, budget_bytes=4 << 20, min_splits=2):
    """Row tile: multiple of the sublane quantum, <= VMEM budget, and capped at
    ceil(rows/min_splits) so v7x's two TensorCores both get work."""
    mult = max(8, 32 // itemsize)                     # 8 for f32, 16 for bf16
    if rows_total <= mult:
        return rows_total                             # single full block
    max_rows = max(mult, (budget_bytes // (width * itemsize)) // mult * mult)
    split = -(-rows_total // min_splits)              # cdiv(rows, min_splits)
    split = -(-split // mult) * mult                  # round up to quantum
    ts = min(max_rows, split)
    if ts >= rows_total:
        return rows_total
    return ts


def sinusoid_table(seq_len, d_model, past_key_values_length=0, dtype=jnp.float32):
    """(seq_len, d_model) sinusoid table == SinusoidEncoding buffer[pkv:pkv+seq]."""
    assert d_model % 2 == 0, "SinusoidEncoding requires even d_model"

    # Lane-dense layout: if d_model is narrower than a 128-lane vreg row and
    # divides it, pack ppr positions per 128-wide slab row (unmasked stores).
    if d_model < 128 and 128 % d_model == 0:
        ppr = 128 // d_model
        w = 128
    else:
        ppr = 1
        w = d_model

    padded_seq = -(-seq_len // ppr) * ppr
    rows_total = padded_seq // ppr

    # Hoisted per-lane constants (tiny (1, w) VMEM inputs):
    lane = jnp.arange(w, dtype=jnp.int32)
    col = lane % d_model                                    # column within d_model
    k = (col // 2).astype(jnp.float32)
    freq = jnp.float32(10000.0) ** (2.0 * k / jnp.float32(d_model))
    inv_freq = (1.0 / freq)[None, :]                        # (1, w) float32
    pos_off = (lane // d_model)[None, :]                    # (1, w) int32
    odd = (col % 2)[None, :]                                # (1, w) int32

    pkv = jnp.array([past_key_values_length], dtype=jnp.int32)

    itemsize = jnp.dtype(dtype).itemsize
    ts = _pick_row_tile(rows_total, w, itemsize)
    grid = (pl.cdiv(rows_total, ts),)                       # partial last block OK

    table = pl.pallas_call(
        functools.partial(_sinusoid_kernel, ppr=ppr),
        out_shape=jax.ShapeDtypeStruct((rows_total, w), dtype),
        grid_spec=pltpu.PrefetchScalarGridSpec(
            num_scalar_prefetch=1,
            grid=grid,
            in_specs=[
                pl.BlockSpec((1, w), lambda s, pkv_ref: (0, 0)),
                pl.BlockSpec((1, w), lambda s, pkv_ref: (0, 0)),
                pl.BlockSpec((1, w), lambda s, pkv_ref: (0, 0)),
            ],
            out_specs=pl.BlockSpec((ts, w), lambda s, pkv_ref: (s, 0)),
        ),
        compiler_params=pltpu.CompilerParams(
            dimension_semantics=("parallel",),
        ),
    )(pkv, inv_freq, pos_off, odd)

    # Free row-major reshape back to (padded_seq, d_model); drop padded tail.
    table = table.reshape(padded_seq, d_model)
    if padded_seq != seq_len:
        table = table[:seq_len]
    return table


def sinusoid_encoding(input_ids, d_model, past_key_values_length=0,
                      dtype=jnp.float32):
    """Equivalent of SinusoidEncoding(max_len, d_model).forward(input_ids, pkv)."""
    bsz, seq_len = input_ids.shape[:2]
    table = sinusoid_table(seq_len, d_model, past_key_values_length, dtype)
    # Batch "repeat" of the PyTorch module as a lazy broadcast (fuses into the
    # consuming elementwise add; no bsz x HBM writes).  Consumers that want to
    # avoid materialization entirely should take sinusoid_table() directly.
    return jnp.broadcast_to(table[None], (bsz, seq_len, d_model))


def _reference(bsz, seq_len, d_model, max_len, past_key_values_length):
    # Pure-JAX reproduction of the PyTorch buffer + forward slice.
    dim = jnp.arange(d_model // 2, dtype=jnp.float32)[None, :] / d_model
    pos = jnp.arange(max_len, dtype=jnp.float32)[:, None]
    sin = jnp.sin(pos / 10000.0 ** (2.0 * dim))
    cos = jnp.cos(pos / 10000.0 ** (2.0 * dim))
    pe = jnp.zeros((max_len, d_model), jnp.float32)
    pe = pe.at[:, ::2].set(sin)
    pe = pe.at[:, 1::2].set(cos)
    sl = pe[past_key_values_length:past_key_values_length + seq_len]
    return jnp.broadcast_to(sl[None], (bsz, seq_len, d_model))


if __name__ == "__main__":
    key = jax.random.PRNGKey(0)
    bsz, seq_len, d_model, max_len = 2, 8, 32, 64
    past_len = 3

    # input_ids only matters for its shape (bsz x seqlen), as in the PyTorch module.
    input_ids = jax.random.randint(key, (bsz, seq_len), 0, 100, dtype=jnp.int32)

    # 1) f32 output (module-exact dtype), narrow d_model -> lane-dense flat path.
    out = sinusoid_encoding(input_ids, d_model, past_key_values_length=past_len)
    out = jax.block_until_ready(out)
    ref = _reference(bsz, seq_len, d_model, max_len, past_len)
    assert out.shape == (bsz, seq_len, d_model)
    assert out.dtype == jnp.float32
    assert jnp.allclose(out, ref, atol=1e-5, rtol=1e-5)

    # 2) bf16 output option (halves HBM write traffic of the table).
    out_bf16 = sinusoid_encoding(input_ids, d_model,
                                 past_key_values_length=past_len,
                                 dtype=jnp.bfloat16)
    out_bf16 = jax.block_until_ready(out_bf16)
    assert out_bf16.dtype == jnp.bfloat16
    assert jnp.allclose(out_bf16.astype(jnp.float32), ref, atol=2e-2, rtol=2e-2)

    # 3) 128-multiple d_model + non-divisible seq_len -> cdiv grid with a
    #    clipped partial last block and >= 2 grid steps.
    seq2, dm2, past2 = 19, 128, 5
    ids2 = jnp.zeros((1, seq2), dtype=jnp.int32)
    out2 = jax.block_until_ready(
        sinusoid_encoding(ids2, dm2, past_key_values_length=past2))
    ref2 = _reference(1, seq2, dm2, 64, past2)
    assert jnp.allclose(out2, ref2, atol=1e-4, rtol=1e-4)

    print("KERNEL_OK")
</pallas_src>

<mosaic_0001>
module attributes {stable_mosaic.version = 11 : i64} {
  func.func @_sinusoid_kernel(%arg0: i32, %arg1: memref<1xi32, #tpu.memory_space<smem>>, %arg2: memref<1x128xf32, #tpu.memory_space<vmem>>, %arg3: memref<1x128xi32, #tpu.memory_space<vmem>>, %arg4: memref<1x128xi32, #tpu.memory_space<vmem>>, %arg5: memref<2x128xf32, #tpu.memory_space<vmem>>) attributes {dimension_semantics = [#tpu.dimension_semantics<parallel>], iteration_bounds = array<i64: 1>, scalar_prefetch = 1 : i64, scratch_operands = 0 : i64, tpu.core_type = #tpu.core_type<tc>, window_params = [{pipeline_mode = #tpu.pipeline_mode<synchronous>, transform_indices = @transform_0, window_bounds = array<i64: 1, 128>}, {pipeline_mode = #tpu.pipeline_mode<synchronous>, transform_indices = @transform_1, window_bounds = array<i64: 1, 128>}, {pipeline_mode = #tpu.pipeline_mode<synchronous>, transform_indices = @transform_2, window_bounds = array<i64: 1, 128>}, {transform_indices = @transform_3, window_bounds = array<i64: 2, 128>}]} {
    %c0 = arith.constant 0 : index
    %0 = memref.load %arg1[%c0] : memref<1xi32, #tpu.memory_space<smem>>
    %c8_i32 = arith.constant 8 : i32
    %1 = arith.muli %arg0, %c8_i32 : i32
    %2 = arith.addi %0, %1 : i32
    %3 = tpu.iota {dimensions = array<i32: 0>} : vector<2x128xi32>
    %c4_i32 = arith.constant 4 : i32
    %4 = vector.broadcast %c4_i32 : i32 to vector<2x128xi32>
    %5 = arith.muli %3, %4 : vector<2x128xi32>
    %6 = vector.broadcast %2 : i32 to vector<2x128xi32>
    %7 = arith.addi %6, %5 : vector<2x128xi32>
    %c0_0 = arith.constant 0 : index
    %c0_1 = arith.constant 0 : index
    %8 = vector.load %arg3[%c0_0, %c0_1] : memref<1x128xi32, #tpu.memory_space<vmem>>, vector<1x128xi32>
    %9 = vector.broadcast %8 : vector<1x128xi32> to vector<2x128xi32>
    %10 = arith.addi %7, %9 : vector<2x128xi32>
    %11 = arith.sitofp %10 : vector<2x128xi32> to vector<2x128xf32>
    %c0_2 = arith.constant 0 : index
    %c0_3 = arith.constant 0 : index
    %12 = vector.load %arg2[%c0_2, %c0_3] : memref<1x128xf32, #tpu.memory_space<vmem>>, vector<1x128xf32>
    %13 = vector.broadcast %12 : vector<1x128xf32> to vector<2x128xf32>
    %14 = arith.mulf %11, %13 : vector<2x128xf32>
    %c0_4 = arith.constant 0 : index
    %c0_5 = arith.constant 0 : index
    %15 = vector.load %arg4[%c0_4, %c0_5] : memref<1x128xi32, #tpu.memory_space<vmem>>, vector<1x128xi32>
    %c1_i32 = arith.constant 1 : i32
    %16 = vector.broadcast %c1_i32 : i32 to vector<1x128xi32>
    %17 = arith.cmpi eq, %15, %16 : vector<1x128xi32>
    %18 = math.cos %14 : vector<2x128xf32>
    %19 = math.sin %14 : vector<2x128xf32>
    %20 = vector.shape_cast %17 : vector<1x128xi1> to vector<1x128xi1>
    %21 = vector.broadcast %20 : vector<1x128xi1> to vector<2x128xi1>
    %22 = arith.select %21, %18, %19 : vector<2x128xi1>, vector<2x128xf32>
    %c0_6 = arith.constant 0 : index
    %c0_7 = arith.constant 0 : index
    %23 = vector.load %arg5[%c0_6, %c0_7] : memref<2x128xf32, #tpu.memory_space<vmem>>, vector<2x128xf32>
    tpu.vector_store %arg5[%c0_6, %c0_7], %22 {strides = array<i32>} : memref<2x128xf32, #tpu.memory_space<vmem>>, vector<2x128xf32>,
    return
  }
  func.func @transform_0(%arg0: i32, %arg1: memref<1xi32, #tpu.memory_space<smem>>) -> (i32, i32) {
    %c0_i32 = arith.constant 0 : i32
    %c0_i32_0 = arith.constant 0 : i32
    %c0_i32_1 = arith.constant 0 : i32
    return %c0_i32, %c0_i32_0 : i32, i32
  }
  func.func @transform_1(%arg0: i32, %arg1: memref<1xi32, #tpu.memory_space<smem>>) -> (i32, i32) {
    %c0_i32 = arith.constant 0 : i32
    %c0_i32_0 = arith.constant 0 : i32
    %c0_i32_1 = arith.constant 0 : i32
    return %c0_i32, %c0_i32_0 : i32, i32
  }
  func.func @transform_2(%arg0: i32, %arg1: memref<1xi32, #tpu.memory_space<smem>>) -> (i32, i32) {
    %c0_i32 = arith.constant 0 : i32
    %c0_i32_0 = arith.constant 0 : i32
    %c0_i32_1 = arith.constant 0 : i32
    return %c0_i32, %c0_i32_0 : i32, i32
  }
  func.func @transform_3(%arg0: i32, %arg1: memref<1xi32, #tpu.memory_space<smem>>) -> (i32, i32) {
    %c0_i32 = arith.constant 0 : i32
    %c0_i32_0 = arith.constant 0 : i32
    return %arg0, %c0_i32 : i32, i32
  }
}

</mosaic_0001>

<bundles_post_ra>
// kernel: tpu_custom_call.1
= control target key start
LH: loop header
LB: loop body
LE: loop exit
PB: predicated region body
PF: predicated region fallthrough
CT: control target
= control target key end

     0   :  { %10 = vsyncpa [#allocation5], 0  ;;  %v20_v0 = vlaneseq  ;;  %v319_v21 = vmov 683565275   ;;  %v320_v23 = vmov 2475754826   ;;  %s392_s0 = inlined_call_operand.<no memory space> [shape: s32[1], index: 0, kind: input, shape index: {}]   ;;  %s393_s1 = inlined_call_operand.vmem [shape: f32[1,128], index: 1, kind: input, shape index: {}]   ;;  %s394_s2 = inlined_call_operand.vmem [shape: s32[1,128], index: 2, kind: input, shape index: {}]   ;;  %s395_s3 = inlined_call_operand.vmem [shape: s32[1,128], index: 3, kind: input, shape index: {}]   ;;  %s396_s4 = inlined_call_operand.hbm [shape: f32[2,128], index: 4, kind: output, shape index: {}]  }
   0x1   :  { %v23_v2 = vstv %s392_s0  ;;  %v271_v4 = vld [vmem:[%s394_s2] ss:$0 sm:$0xff]  ;;  %v321_v25 = vmov 2131351028   ;;  %v322_v27 = vmov 2102212464  }
   0x2   :  { %v352_v1 = vshrl.u32 %v20_v0, 7  ;;  %v272_v7 = vld [vmem:[%s393_s1] ss:$0 sm:$0xff]  ;;  %v323_v29 = vmov 920167782   ;;  %s326_s2 = smov [#allocation4]  }
   0x3   :  { %v324_v36 = vmov 1326507024  }
   0x4   :  { %v22_v3 = vmul.u32 4, %v352_v1 }
   0x6   :  { %v24_v5 = vadd.s32 %v23_v2, %v22_v3 }
   0x8   :  { %v30_v6 = vadd.s32 %v271_v4, %v24_v5 }
   0xa   :  { %v31_v8 = vcvt.s32.f32 %v30_v6 }
   0xc   :  { %v364_v9 = vmul.f32 %v272_v7, %v31_v8 }
   0xe   :  { %v45_v10 = vand.u32 2139095040, %v364_v9  ;;  %v42_v12 = vand.u32 2147483647, %v364_v9  ;;  %vm44_vm7 = vcmp.lt.s32.totalorder %v364_v9, 0 }
  0x10   :  { %v46_v11 = vshrl.u32 %v45_v10, 23  ;;  %v49_v15 = vand.u32 8388607, %v42_v12  ;;  %vm43_vm8 = vcmp.le.f32.partialorder %v42_v12, 0.7853982 }
  0x12   :  { %v273_v13 = vadd.s32 4294967169, %v46_v11  ;;  %v50_v18 = vor.u32 8388608, %v49_v15 }
  0x14   :  { %v52_v14 = vadd.s32 1, %v273_v13  ;;  %v90_v38 = vshll.u32 %v50_v18, 8 }
  0x16   :  { %vm53_vm0 = vcmp.gt.s32.totalorder %v52_v14, 0 }
  0x17   :  { %v54_v16 = vsel %vm53_vm0, %v52_v14, 0  ;;  %vm134_vm0 = vweird.f32 %v364_v9 }
  0x18   :  { %v56_v17 = vand.u32 31, %v54_v16  ;;  %v55_v19 = vshrl.u32 %v54_v16, 5 }
  0x1a   :  { %v57_v20 = vsub.s32 32, %v56_v17  ;;  %v59_v22 = vshll.u32 %v319_v21, %v56_v17  ;;  %v62_v24 = vshll.u32 %v320_v23, %v56_v17  ;;  %v65_v26 = vshll.u32 %v321_v25, %v56_v17 }
  0x1b   :  { %v68_v28 = vshll.u32 %v322_v27, %v56_v17  ;;  %v71_v30 = vshll.u32 %v323_v29, %v56_v17  ;;  %vm74_vm1 = vcmp.lt.s32.totalorder %v55_v19, 1  ;;  %vm77_vm2 = vcmp.lt.s32.totalorder %v55_v19, 4 }
  0x1c   :  { %v58_v31 = vshrl.u32 %v319_v21, %v57_v20  ;;  %v60_v32 = vshrl.u32 %v320_v23, %v57_v20  ;;  %v63_v33 = vshrl.u32 %v321_v25, %v57_v20  ;;  %v66_v34 = vshrl.u32 %v322_v27, %v57_v20 }
  0x1d   :  { %v69_v35 = vshrl.u32 %v323_v29, %v57_v20  ;;  %v72_v37 = vshrl.u32 %v324_v36, %v57_v20  ;;  %vm75_vm3 = vcmp.lt.s32.totalorder %v55_v19, 2  ;;  %vm76_vm4 = vcmp.lt.s32.totalorder %v55_v19, 3 }
  0x1e   :  { %v61_v39 = vor.u32 %v60_v32, %v59_v22  ;;  %v64_v40 = vor.u32 %v63_v33, %v62_v24  ;;  %v67_v41 = vor.u32 %v66_v34, %v65_v26  ;;  %v252_v34 = vsub.s32 0, %v352_v1 }
  0x1f   :  { %v70_v42 = vor.u32 %v69_v35, %v68_v28  ;;  %v73_v43 = vor.u32 %v72_v37, %v71_v30  ;;  %v40_v30 = vld [vmem:[%s395_s3] sm:$0x1]  ;;  %v325_v35 = vmov 0   ;;  %s263_s3 = sshll.u32 %s326_s2, 4  ;;  %s264_s3 = int_to_ptr.vmem [resolvable:$true] %s263_s3 }
  0x20   :  { %v78_v44 = vsel %vm74_vm1, %v58_v31, %v61_v39  ;;  %v79_v45 = vsel %vm77_vm2, %v67_v41, 2102212464  ;;  %v82_v46 = vsel %vm74_vm1, %v61_v39, %v64_v40  ;;  %v86_v47 = vsel %vm74_vm1, %v64_v40, %v67_v41  ;;  %s297_s21 = scalar_lea.vmem %s264_s3, 32  ;;  %p302_p1 = scmp.lt.s32.totalorder %s264_s3, %s264_s3 }
  0x21   :  { %v80_v48 = vsel %vm76_vm4, %v64_v40, %v79_v45  ;;  %v83_v49 = vsel %vm77_vm2, %v70_v42, 920167782  ;;  %v87_v50 = vsel %vm77_vm2, %v73_v43, 1326507024  ;;  %vm41_vm9 = vcmp.eq.s32.totalorder %v40_v30, 1  ;;  %p298_p0 = scmp.ne.s32.totalorder %s264_s3, %s297_s21  ;;  %p303_p2 = scmp.lt.s32.totalorder %s297_s21, %s297_s21 }
  0x22   :  { %v84_v51 = vsel %vm76_vm4, %v67_v41, %v83_v49  ;;  %v88_v52 = vsel %vm76_vm4, %v70_v42, %v87_v50  ;;  %v81_v53 = vsel %vm75_vm3, %v78_v44, %v80_v48  ;;  %v249_v12 = vsel %vm41_vm9, 1, %v325_v35 }
  0x23   :  { %v85_v54 = vsel %vm75_vm3, %v82_v46, %v84_v51  ;;  %v89_v55 = vsel %vm75_vm3, %v86_v47, %v88_v52  ;;  %v97_v60 = vmul.u32 %v90_v38, %v81_v53  ;;  %v253_v37 = vrot.slane %v249_v12, %v252_v34  ;;  %p304_p3 = por %p303_p2, %p302_p1 }
  0x24   :  { %v370_v56 = vmul.u32.u64.low %v90_v38, %v89_v55  ;;  %v371_v57 = vmul.u32.u64.high %v90_v38, %v89_v55, %v370_v56  ;;  %v373_v58 = vmul.u32.u64.low %v90_v38, %v85_v54  ;;  %v374_v59 = vmul.u32.u64.high %v90_v38, %v85_v54, %v373_v58 }
  0x25   :  { %vm254_vm1 = vcmp.eq.s32.totalorder %v253_v37, 1  ;;  %p305_p4 = pnand %p304_p3, %p298_p0 }
  0x26   :  { %vm99_vm5 = vc.u32 %v371_v57, %v373_v58  ;;  %v100_v61 = vadd.s32 1, %v374_v59  ;;  %v98_v10 = vadd.s32 %v373_v58, %v371_v57 }
  0x28   :  { %v101_v62 = vsel %vm99_vm5, %v100_v61, %v374_v59 }
  0x29   :  { %v102_v63 = vadd.s32 %v101_v62, %v97_v60 }
  0x2b   :  { %v103_v0 = vadd.s32 536870912, %v102_v63 }
  0x2d   :  { %v104_v2 = vshrl.u32 %v103_v0, 30 }
  0x2f   :  { %v105_v3 = vshll.u32 %v104_v2, 30  ;;  %v128_v24 = vsub.s32 4, %v104_v2 }
  0x31   :  { %v106_v4 = vsub.s32 %v102_v63, %v105_v3  ;;  %v129_v27 = vsel %vm44_vm7, %v128_v24, %v104_v2 }
  0x32   :  { %v131_v29 = vsel %vm43_vm8, 0, %v129_v27 }
  0x33   :  { %v108_v5 = vsub.s32 0, %v106_v4  ;;  %v238_v31 = vadd.s32 3, %v131_v29  ;;  %v135_v32 = vand.u32 3, %v131_v29 }
  0x35   :  { %v274_v6 = vmin.u32 %v108_v5, %v106_v4  ;;  %v239_v33 = vand.u32 3, %v238_v31  ;;  %vm140_vm10 = vcmp.eq.s32.totalorder %v135_v32, 2  ;;  %vm137_vm12 = vcmp.eq.s32.totalorder %v135_v32, 0 }
  0x36   :  { %vm136_vm14 = vcmp.lt.s32.totalorder %v135_v32, 2 }
  0x37   :  { %v110_v7 = vclz %v274_v6  ;;  %vm244_vm11 = vcmp.eq.s32.totalorder %v239_v33, 2  ;;  %vm241_vm13 = vcmp.eq.s32.totalorder %v239_v33, 0  ;;  %vm240_vm15 = vcmp.lt.s32.totalorder %v239_v33, 2 }
  0x39   :  { %v275_v8 = vadd.s32 4294967294, %v110_v7 }
  0x3b   :  { %vm276_vm6 = vcmp.lt.s32.totalorder %v275_v8, 0 }
  0x3c   :  { %v113_v11 = vsel %vm276_vm6, 0, %v275_v8 }
  0x3d   :  { %v114_v13 = vsub.s32 32, %v113_v11  ;;  %v115_v14 = vshll.u32 %v106_v4, %v113_v11  ;;  %v118_v15 = vsub.s32 4294967266, %v113_v11 }
  0x3f   :  { %v116_v16 = vshrl.u32 %v98_v10, %v114_v13  ;;  %v119_v17 = vadd.s32 127, %v118_v15 }
  0x41   :  { %v117_v18 = vor.u32 %v116_v16, %v115_v14  ;;  %v120_v19 = vshll.u32 %v119_v17, 23 }
  0x43   :  { %v121_v20 = vor.u32 4788187, %v120_v19  ;;  %v124_v21 = vcvt.s32.f32 %v117_v18 }
  0x45   :  { %v122_v22 = vand.u32 2147483647, %v121_v20 }
  0x47   :  { %v125_v23 = vmul.f32 %v124_v21, %v122_v22 }
  0x49   :  { %v126_v25 = vxor.u32 2147483648, %v125_v23 }
  0x4b   :  { %v127_v26 = vsel %vm44_vm7, %v126_v25, %v125_v23 }
  0x4c   :  { %v130_v28 = vsel %vm43_vm8, %v364_v9, %v127_v26 }
  0x4d   :  { %293 = vcosq.f32 %v130_v28 }
  0x4e   :  { %295 = vsinq.f32 %v130_v28 }
  0x5a   :  { %v294_v36 = vpop.eup %293 }
  0x5b   :  { %v296_v38 = vpop.eup %295  ;;  %v141_v39 = vxor.u32 2147483648, %v294_v36 }
  0x5c   :  { %v138_v40 = vxor.u32 2147483648, %v296_v38 }
  0x5d   :  { %v142_v41 = vsel %vm140_vm10, %v141_v39, %v296_v38  ;;  %v246_v42 = vsel %vm244_vm11, %v141_v39, %v296_v38 }
  0x5e   :  { %v139_v1 = vsel %vm137_vm12, %v294_v36, %v138_v40  ;;  %v243_v43 = vsel %vm241_vm13, %v294_v36, %v138_v40 }
  0x5f   :  { %v143_v44 = vsel %vm136_vm14, %v139_v1, %v142_v41  ;;  %v247_v45 = vsel %vm240_vm15, %v243_v43, %v246_v42 }
  0x60   :  { %v144_v46 = vsel %vm134_vm0, nan, %v143_v44  ;;  %v248_v47 = vsel %vm134_vm0, nan, %v247_v45 }
  0x61   :  { %v255_v48 = vsel %vm254_vm1, %v144_v46, %v248_v47 }
  0x62   :  { %256 = vst [vmem:[#allocation4] sm:$0x3] %v255_v48 }
  0x63   :  { %308 = shalt.err (!%p305_p4)
}
  0x64   :  { %266 = dma.vmem_to_hbm [thread:$0]  %s264_s3, 32, %s396_s4, [#allocation5]  }
  0x65   :  { %317 = dma.done.wait [#allocation5], 32  }
  0x66   :  { %318 = vsyncadd [#allocation5], 4294967264 }
  0x67   :  { %270 = vsyncpa [#allocation5], 1 }

</bundles_post_ra>
